<compile_context>
chip_gen: v7x
topology: tpu7x:2x2x1
jax: 0.10.0
libtpu: 0.0.40
codegen_flags: <defaults>
</compile_context>

<pallas_src>
import functools

import jax
import jax.numpy as jnp
from jax.experimental import pallas as pl
from jax.experimental.pallas import tpu as pltpu

MARGIN = 4.0
ALPHA = 0.8
BETA = 0.2
_NORM_EPS = 1e-12   # F.normalize default eps
_PDIST_EPS = 1e-6   # F.pairwise_distance default eps

_TILE_VMEM_BUDGET = 12 * 1024 * 1024   # per-buffer budget; x2 for double-buffering
_MAX_TILE_ROWS = 512                   # >=512-row tiles reach ~85% of HBM roofline
_VMEM_LIMIT_BYTES = 32 * 1024 * 1024   # explicit scoped-VMEM limit, safe on v5e/v6e/v7x


def _round_up(x, m):
    return (x + m - 1) // m * m


def _choose_tile_rows(batch, num_classes, dim):
    """Largest batch tile (multiple of 8) whose double-buffered operands fit budget."""
    # targets block is lane-padded to 128; accept that (tiny) cost knowingly.
    per_row_bytes = 4 * (_round_up(num_classes, 128) + 128 + 3 * _round_up(dim, 128))
    tb = _TILE_VMEM_BUDGET // (2 * per_row_bytes)
    tb = max(8, min(_MAX_TILE_ROWS, (tb // 8) * 8))
    return min(tb, _round_up(batch, 8))


def _hybrid_loss_kernel(batch, tile_rows,
                        logits_ref, targets_ref, emb_ref, pos_ref, neg_ref, out_ref):
    i = pl.program_id(0)
    logits = logits_ref[...]                      # (TB, C) f32
    targets = targets_ref[...]                    # (TB, 1) i32
    tb, num_classes = logits.shape

    # Rows beyond the true batch (padding of the final tile) contribute zero.
    rows = i * tile_rows + jax.lax.broadcasted_iota(jnp.int32, (tb, 1), 0)
    valid = rows < batch                          # (TB, 1) bool

    # ---- Cross entropy partial sum (mean reduction applied in the wrapper) ----
    row_max = jnp.max(logits, axis=-1, keepdims=True)
    shifted = logits - row_max
    sum_exp = jnp.sum(jnp.exp(shifted), axis=-1, keepdims=True)
    class_ids = jax.lax.broadcasted_iota(jnp.int32, (tb, num_classes), 1)
    # where-select instead of one-hot multiply (no (B,C) cast/mul, no 0*-inf NaN)
    picked_sh = jnp.sum(jnp.where(class_ids == targets, shifted, 0.0),
                        axis=-1, keepdims=True)   # = logits[target] - row_max
    ce_rows = jnp.log(sum_exp) - picked_sh        # row_max cancels
    ce_sum = jnp.sum(jnp.where(valid, ce_rows, 0.0))

    # ---- Contrastive partial sum (ContrastiveLoss applied per sample) ----
    emb = emb_ref[...]                            # (TB, D)
    # output1 = F.normalize(embedding, p=2, dim=0): (D,) vector -> full L2 norm.
    sq = jnp.sum(emb * emb, axis=-1, keepdims=True)
    inv_norm = jax.lax.rsqrt(jnp.maximum(sq, _NORM_EPS * _NORM_EPS))  # exact rsqrt (EUP)
    emb_n = emb * inv_norm

    def _log_dist(ref_vals):
        # output2 = F.normalize(ref.unsqueeze(0), p=2, dim=0): per-element
        # x / max(|x|, eps)  ==  clip(x / eps, -1, 1)  -> one mul + clamp, no divide.
        r_n = jnp.clip(ref_vals * (1.0 / _NORM_EPS), -1.0, 1.0)
        diff = emb_n - r_n + _PDIST_EPS           # F.pairwise_distance eps
        d = jnp.sqrt(jnp.sum(diff * diff, axis=-1, keepdims=True))
        return jnp.log1p(d)                       # log(1 + d)

    ed_pos = _log_dist(pos_ref[...])
    ed_neg = _log_dist(neg_ref[...])
    hinge = jnp.maximum(MARGIN - ed_neg, 0.0)
    cont_rows = ed_pos * ed_pos + hinge * hinge   # label==1 term + label==0 term
    cont_sum = jnp.sum(jnp.where(valid, cont_rows, 0.0))

    # Lane-dense (1, 8, 128) partial-sum slab: [0,0,0]=CE sum, [0,0,1]=contrastive sum.
    sub = jax.lax.broadcasted_iota(jnp.int32, (1, 8, 128), 1)
    lane = jax.lax.broadcasted_iota(jnp.int32, (1, 8, 128), 2)
    out_ref[...] = jnp.where((sub == 0) & (lane == 0), ce_sum,
                             jnp.where((sub == 0) & (lane == 1), cont_sum, 0.0))


@jax.jit
def hybrid_loss(logits, targets, embeddings, pos_refs, neg_refs):
    batch, num_classes = logits.shape
    dim = embeddings.shape[1]

    tb = _choose_tile_rows(batch, num_classes, dim)
    num_tiles = pl.cdiv(batch, tb)
    padded = num_tiles * tb

    def pad_rows(x):
        if x.shape[0] == padded:
            return x
        return jnp.pad(x, ((0, padded - x.shape[0]), (0, 0)))

    logits_p = pad_rows(logits.astype(jnp.float32))
    targets_p = pad_rows(targets.reshape(batch, 1).astype(jnp.int32))
    emb_p = pad_rows(embeddings.astype(jnp.float32))
    pos_p = pad_rows(pos_refs.astype(jnp.float32))
    neg_p = pad_rows(neg_refs.astype(jnp.float32))

    cost = pl.CostEstimate(
        flops=int(6 * batch * num_classes + 14 * batch * dim),
        transcendentals=int(batch * num_classes + 8 * batch),
        bytes_accessed=int(4 * (batch * num_classes + batch + 3 * batch * dim)),
    )

    partials = pl.pallas_call(
        functools.partial(_hybrid_loss_kernel, batch, tb),
        out_shape=jax.ShapeDtypeStruct((num_tiles, 8, 128), jnp.float32),
        grid=(num_tiles,),
        in_specs=[
            pl.BlockSpec((tb, num_classes), lambda i: (i, 0)),
            pl.BlockSpec((tb, 1), lambda i: (i, 0)),
            pl.BlockSpec((tb, dim), lambda i: (i, 0)),
            pl.BlockSpec((tb, dim), lambda i: (i, 0)),
            pl.BlockSpec((tb, dim), lambda i: (i, 0)),
        ],
        out_specs=pl.BlockSpec((1, 8, 128), lambda i: (i, 0, 0)),
        compiler_params=pltpu.CompilerParams(
            dimension_semantics=("parallel",),
            vmem_limit_bytes=_VMEM_LIMIT_BYTES,
        ),
        cost_estimate=cost,
    )(logits_p, targets_p, emb_p, pos_p, neg_p)

    # Global mean reductions + hybrid combine done once in the wrapper.
    ce_loss = jnp.sum(partials[:, 0, 0]) / batch
    cont_loss = jnp.sum(partials[:, 0, 1]) / batch
    return ALPHA * ce_loss + BETA * cont_loss


def _reference(logits, targets, embeddings, pos_refs, neg_refs):
    """Pure-JAX reference mirroring the PyTorch semantics."""
    B, C = logits.shape
    lse = jax.nn.logsumexp(logits, axis=-1)
    picked = jnp.take_along_axis(logits, targets.reshape(B, 1), axis=-1)[:, 0]
    ce = jnp.mean(lse - picked)

    row_norm = jnp.linalg.norm(embeddings, axis=-1, keepdims=True)
    emb_n = embeddings / jnp.maximum(row_norm, _NORM_EPS)

    def log_dist(refs):
        r_n = refs / jnp.maximum(jnp.abs(refs), _NORM_EPS)
        d = jnp.linalg.norm(emb_n - r_n + _PDIST_EPS, axis=-1)
        return jnp.log1p(d)

    ed_pos = log_dist(pos_refs)
    ed_neg = log_dist(neg_refs)
    cont = jnp.mean(ed_pos**2 + jnp.maximum(MARGIN - ed_neg, 0.0) ** 2)
    return ALPHA * ce + BETA * cont


if __name__ == "__main__":
    B, C, D = 4, 8, 32
    key = jax.random.PRNGKey(0)
    k1, k2, k3, k4, k5 = jax.random.split(key, 5)

    logits = jax.random.normal(k1, (B, C), dtype=jnp.float32)
    targets = jax.random.randint(k2, (B,), 0, C, dtype=jnp.int32)
    embeddings = jax.random.normal(k3, (B, D), dtype=jnp.float32)
    pos_refs = jax.random.normal(k4, (B, D), dtype=jnp.float32)
    neg_refs = jax.random.normal(k5, (B, D), dtype=jnp.float32)

    loss = hybrid_loss(logits, targets, embeddings, pos_refs, neg_refs)
    jax.block_until_ready(loss)

    ref = _reference(logits, targets, embeddings, pos_refs, neg_refs)
    assert jnp.allclose(loss, ref, rtol=1e-5, atol=1e-5), (loss, ref)

    print("KERNEL_OK")
</pallas_src>

<mosaic_0001>
module attributes {stable_mosaic.version = 11 : i64} {
  func.func @_hybrid_loss_kernel(%arg0: i32, %arg1: memref<8x8xf32, #tpu.memory_space<vmem>>, %arg2: memref<8x1xi32, #tpu.memory_space<vmem>>, %arg3: memref<8x32xf32, #tpu.memory_space<vmem>>, %arg4: memref<8x32xf32, #tpu.memory_space<vmem>>, %arg5: memref<8x32xf32, #tpu.memory_space<vmem>>, %arg6: memref<1x8x128xf32, #tpu.memory_space<vmem>>) attributes {dimension_semantics = [#tpu.dimension_semantics<parallel>], iteration_bounds = array<i64: 1>, scalar_prefetch = 0 : i64, scratch_operands = 0 : i64, tpu.core_type = #tpu.core_type<tc>, window_params = [{transform_indices = @transform_0, window_bounds = array<i64: 8, 8>}, {transform_indices = @transform_1, window_bounds = array<i64: 8, 1>}, {transform_indices = @transform_2, window_bounds = array<i64: 8, 32>}, {transform_indices = @transform_3, window_bounds = array<i64: 8, 32>}, {transform_indices = @transform_4, window_bounds = array<i64: 8, 32>}, {transform_indices = @transform_5, window_bounds = array<i64: 1, 8, 128>}]} {
    %c0 = arith.constant 0 : index
    %c0_0 = arith.constant 0 : index
    %0 = vector.load %arg1[%c0, %c0_0] : memref<8x8xf32, #tpu.memory_space<vmem>>, vector<8x8xf32>
    %c0_1 = arith.constant 0 : index
    %c0_2 = arith.constant 0 : index
    %1 = vector.load %arg2[%c0_1, %c0_2] : memref<8x1xi32, #tpu.memory_space<vmem>>, vector<8x1xi32>
    %c8_i32 = arith.constant 8 : i32
    %2 = arith.muli %arg0, %c8_i32 : i32
    %3 = tpu.iota {dimensions = array<i32: 0>} : vector<8x1xi32>
    %4 = vector.broadcast %2 : i32 to vector<8x1xi32>
    %5 = arith.addi %4, %3 : vector<8x1xi32>
    %c4_i32 = arith.constant 4 : i32
    %6 = vector.broadcast %c4_i32 : i32 to vector<8x1xi32>
    %7 = arith.cmpi slt, %5, %6 : vector<8x1xi32>
    %cst = arith.constant dense<0xFF800000> : vector<8xf32>
    %8 = vector.multi_reduction <maximumf>, %0, %cst [1] : vector<8x8xf32> to vector<8xf32>
    %9 = vector.shape_cast %8 : vector<8xf32> to vector<8x1xf32>
    %10 = vector.broadcast %9 : vector<8x1xf32> to vector<8x8xf32>
    %11 = arith.subf %0, %10 : vector<8x8xf32>
    %12 = math.exp %11 : vector<8x8xf32>
    %cst_3 = arith.constant dense<0.000000e+00> : vector<8xf32>
    %13 = vector.multi_reduction <add>, %12, %cst_3 [1] : vector<8x8xf32> to vector<8xf32>
    %14 = vector.shape_cast %13 : vector<8xf32> to vector<8x1xf32>
    %15 = tpu.iota {dimensions = array<i32: 1>} : vector<8x8xi32>
    %16 = vector.broadcast %1 : vector<8x1xi32> to vector<8x8xi32>
    %17 = arith.cmpi eq, %15, %16 : vector<8x8xi32>
    %cst_4 = arith.constant 0.000000e+00 : f32
    %18 = vector.broadcast %cst_4 : f32 to vector<8x8xf32>
    %19 = arith.select %17, %11, %18 : vector<8x8xi1>, vector<8x8xf32>
    %cst_5 = arith.constant dense<0.000000e+00> : vector<8xf32>
    %20 = vector.multi_reduction <add>, %19, %cst_5 [1] : vector<8x8xf32> to vector<8xf32>
    %21 = vector.shape_cast %20 : vector<8xf32> to vector<8x1xf32>
    %22 = math.log %14 : vector<8x1xf32>
    %23 = arith.subf %22, %21 : vector<8x1xf32>
    %cst_6 = arith.constant 0.000000e+00 : f32
    %24 = vector.broadcast %cst_6 : f32 to vector<8x1xf32>
    %25 = arith.select %7, %23, %24 : vector<8x1xi1>, vector<8x1xf32>
    %26 = vector.shape_cast %25 : vector<8x1xf32> to vector<1x8x1xf32>
    %cst_7 = arith.constant dense<0.000000e+00> : vector<1xf32>
    %27 = vector.multi_reduction <add>, %26, %cst_7 [1, 2] : vector<1x8x1xf32> to vector<1xf32>
    %28 = vector.shape_cast %27 : vector<1xf32> to vector<1x1x1xf32>
    %29 = vector.extract %28[0, 0, 0] : f32 from vector<1x1x1xf32>
    %c0_8 = arith.constant 0 : index
    %c0_9 = arith.constant 0 : index
    %30 = vector.load %arg3[%c0_8, %c0_9] : memref<8x32xf32, #tpu.memory_space<vmem>>, vector<8x32xf32>
    %31 = arith.mulf %30, %30 : vector<8x32xf32>
    %cst_10 = arith.constant dense<0.000000e+00> : vector<8xf32>
    %32 = vector.multi_reduction <add>, %31, %cst_10 [1] : vector<8x32xf32> to vector<8xf32>
    %33 = vector.shape_cast %32 : vector<8xf32> to vector<8x1xf32>
    %cst_11 = arith.constant 1.000000e-24 : f32
    %34 = vector.broadcast %cst_11 : f32 to vector<8x1xf32>
    %35 = arith.maximumf %33, %34 : vector<8x1xf32>
    %36 = math.rsqrt %35 : vector<8x1xf32>
    %37 = vector.broadcast %36 : vector<8x1xf32> to vector<8x32xf32>
    %38 = arith.mulf %30, %37 : vector<8x32xf32>
    %c0_12 = arith.constant 0 : index
    %c0_13 = arith.constant 0 : index
    %39 = vector.load %arg4[%c0_12, %c0_13] : memref<8x32xf32, #tpu.memory_space<vmem>>, vector<8x32xf32>
    %cst_14 = arith.constant 9.99999995E+11 : f32
    %40 = vector.broadcast %cst_14 : f32 to vector<8x32xf32>
    %41 = arith.mulf %39, %40 : vector<8x32xf32>
    %cst_15 = arith.constant -1.000000e+00 : f32
    %cst_16 = arith.constant 1.000000e+00 : f32
    %42 = vector.broadcast %cst_15 : f32 to vector<8x32xf32>
    %43 = arith.maximumf %42, %41 : vector<8x32xf32>
    %44 = vector.broadcast %cst_16 : f32 to vector<8x32xf32>
    %45 = arith.minimumf %44, %43 : vector<8x32xf32>
    %46 = arith.subf %38, %45 : vector<8x32xf32>
    %cst_17 = arith.constant 9.99999997E-7 : f32
    %47 = vector.broadcast %cst_17 : f32 to vector<8x32xf32>
    %48 = arith.addf %46, %47 : vector<8x32xf32>
    %49 = arith.mulf %48, %48 : vector<8x32xf32>
    %cst_18 = arith.constant dense<0.000000e+00> : vector<8xf32>
    %50 = vector.multi_reduction <add>, %49, %cst_18 [1] : vector<8x32xf32> to vector<8xf32>
    %51 = vector.shape_cast %50 : vector<8xf32> to vector<8x1xf32>
    %52 = math.sqrt %51 : vector<8x1xf32>
    %53 = math.log1p %52 : vector<8x1xf32>
    %c0_19 = arith.constant 0 : index
    %c0_20 = arith.constant 0 : index
    %54 = vector.load %arg5[%c0_19, %c0_20] : memref<8x32xf32, #tpu.memory_space<vmem>>, vector<8x32xf32>
    %cst_21 = arith.constant 9.99999995E+11 : f32
    %55 = vector.broadcast %cst_21 : f32 to vector<8x32xf32>
    %56 = arith.mulf %54, %55 : vector<8x32xf32>
    %cst_22 = arith.constant -1.000000e+00 : f32
    %cst_23 = arith.constant 1.000000e+00 : f32
    %57 = vector.broadcast %cst_22 : f32 to vector<8x32xf32>
    %58 = arith.maximumf %57, %56 : vector<8x32xf32>
    %59 = vector.broadcast %cst_23 : f32 to vector<8x32xf32>
    %60 = arith.minimumf %59, %58 : vector<8x32xf32>
    %61 = arith.subf %38, %60 : vector<8x32xf32>
    %cst_24 = arith.constant 9.99999997E-7 : f32
    %62 = vector.broadcast %cst_24 : f32 to vector<8x32xf32>
    %63 = arith.addf %61, %62 : vector<8x32xf32>
    %64 = arith.mulf %63, %63 : vector<8x32xf32>
    %cst_25 = arith.constant dense<0.000000e+00> : vector<8xf32>
    %65 = vector.multi_reduction <add>, %64, %cst_25 [1] : vector<8x32xf32> to vector<8xf32>
    %66 = vector.shape_cast %65 : vector<8xf32> to vector<8x1xf32>
    %67 = math.sqrt %66 : vector<8x1xf32>
    %68 = math.log1p %67 : vector<8x1xf32>
    %cst_26 = arith.constant 4.000000e+00 : f32
    %69 = vector.broadcast %cst_26 : f32 to vector<8x1xf32>
    %70 = arith.subf %69, %68 : vector<8x1xf32>
    %cst_27 = arith.constant 0.000000e+00 : f32
    %71 = vector.broadcast %cst_27 : f32 to vector<8x1xf32>
    %72 = arith.maximumf %70, %71 : vector<8x1xf32>
    %73 = arith.mulf %53, %53 : vector<8x1xf32>
    %74 = arith.mulf %72, %72 : vector<8x1xf32>
    %75 = arith.addf %73, %74 : vector<8x1xf32>
    %cst_28 = arith.constant 0.000000e+00 : f32
    %76 = vector.broadcast %cst_28 : f32 to vector<8x1xf32>
    %77 = arith.select %7, %75, %76 : vector<8x1xi1>, vector<8x1xf32>
    %78 = vector.shape_cast %77 : vector<8x1xf32> to vector<1x8x1xf32>
    %cst_29 = arith.constant dense<0.000000e+00> : vector<1xf32>
    %79 = vector.multi_reduction <add>, %78, %cst_29 [1, 2] : vector<1x8x1xf32> to vector<1xf32>
    %80 = vector.shape_cast %79 : vector<1xf32> to vector<1x1x1xf32>
    %81 = vector.extract %80[0, 0, 0] : f32 from vector<1x1x1xf32>
    %82 = tpu.iota {dimensions = array<i32: 1>} : vector<1x8x128xi32>
    %83 = tpu.iota {dimensions = array<i32: 2>} : vector<1x8x128xi32>
    %c0_i32 = arith.constant 0 : i32
    %84 = vector.broadcast %c0_i32 : i32 to vector<1x8x128xi32>
    %85 = arith.cmpi eq, %82, %84 : vector<1x8x128xi32>
    %c0_i32_30 = arith.constant 0 : i32
    %86 = vector.broadcast %c0_i32_30 : i32 to vector<1x8x128xi32>
    %87 = arith.cmpi eq, %83, %86 : vector<1x8x128xi32>
    %88 = arith.andi %85, %87 : vector<1x8x128xi1>
    %c0_i32_31 = arith.constant 0 : i32
    %89 = vector.broadcast %c0_i32_31 : i32 to vector<1x8x128xi32>
    %90 = arith.cmpi eq, %82, %89 : vector<1x8x128xi32>
    %c1_i32 = arith.constant 1 : i32
    %91 = vector.broadcast %c1_i32 : i32 to vector<1x8x128xi32>
    %92 = arith.cmpi eq, %83, %91 : vector<1x8x128xi32>
    %93 = arith.andi %90, %92 : vector<1x8x128xi1>
    %cst_32 = arith.constant 0.000000e+00 : f32
    %94 = vector.broadcast %81 : f32 to vector<1x8x128xf32>
    %95 = vector.broadcast %cst_32 : f32 to vector<1x8x128xf32>
    %96 = arith.select %93, %94, %95 : vector<1x8x128xi1>, vector<1x8x128xf32>
    %97 = vector.broadcast %29 : f32 to vector<1x8x128xf32>
    %98 = arith.select %88, %97, %96 : vector<1x8x128xi1>, vector<1x8x128xf32>
    %c0_33 = arith.constant 0 : index
    %c0_34 = arith.constant 0 : index
    %c0_35 = arith.constant 0 : index
    %99 = vector.load %arg6[%c0_33, %c0_34, %c0_35] : memref<1x8x128xf32, #tpu.memory_space<vmem>>, vector<1x8x128xf32>
    tpu.vector_store %arg6[%c0_33, %c0_34, %c0_35], %98 {strides = array<i32>} : memref<1x8x128xf32, #tpu.memory_space<vmem>>, vector<1x8x128xf32>,
    return
  }
  func.func @transform_0(%arg0: i32) -> (i32, i32) {
    %c0_i32 = arith.constant 0 : i32
    %c0_i32_0 = arith.constant 0 : i32
    return %arg0, %c0_i32 : i32, i32
  }
  func.func @transform_1(%arg0: i32) -> (i32, i32) {
    %c0_i32 = arith.constant 0 : i32
    %c0_i32_0 = arith.constant 0 : i32
    return %arg0, %c0_i32 : i32, i32
  }
  func.func @transform_2(%arg0: i32) -> (i32, i32) {
    %c0_i32 = arith.constant 0 : i32
    %c0_i32_0 = arith.constant 0 : i32
    return %arg0, %c0_i32 : i32, i32
  }
  func.func @transform_3(%arg0: i32) -> (i32, i32) {
    %c0_i32 = arith.constant 0 : i32
    %c0_i32_0 = arith.constant 0 : i32
    return %arg0, %c0_i32 : i32, i32
  }
  func.func @transform_4(%arg0: i32) -> (i32, i32) {
    %c0_i32 = arith.constant 0 : i32
    %c0_i32_0 = arith.constant 0 : i32
    return %arg0, %c0_i32 : i32, i32
  }
  func.func @transform_5(%arg0: i32) -> (i32, i32, i32) {
    %c0_i32 = arith.constant 0 : i32
    %c0_i32_0 = arith.constant 0 : i32
    %c0_i32_1 = arith.constant 0 : i32
    return %arg0, %c0_i32, %c0_i32_0 : i32, i32, i32
  }
}

</mosaic_0001>

<bundles_post_ra>
// kernel: hybrid_loss.1
= control target key start
LH: loop header
LB: loop body
LE: loop exit
PB: predicated region body
PF: predicated region fallthrough
CT: control target
= control target key end

     0   :  { %vm65_vm0 = vcmask 261120   ;;  %v177_v1 = vmov 0   ;;  %vm28_vm1 = vcmask 64512   ;;  %v23_v20 = vlaneseq  ;;  %s247_s2 = inlined_call_operand.vmem [shape: f32[8,32], index: 2, kind: input, shape index: {}]   ;;  %s248_s0 = inlined_call_operand.vmem [shape: f32[8,8], index: 0, kind: input, shape index: {}]   ;;  %s249_s1 = inlined_call_operand.vmem [shape: s32[8,1], index: 1, kind: input, shape index: {}]   ;;  %s250_s4 = inlined_call_operand.vmem [shape: f32[8,32], index: 4, kind: input, shape index: {}]   ;;  %s251_s3 = inlined_call_operand.vmem [shape: f32[8,32], index: 3, kind: input, shape index: {}]   ;;  %s252_s5 = inlined_call_operand.vmem [shape: f32[1,8,128], index: 5, kind: output, shape index: {}]  }
   0x1   :  { %v63_v0 = vld [vmem:[%s247_s2] sm:$0xff]  ;;  %161 = vset.pattern.permute.xlu1 %v177_v1  ;;  %162 = vset.pattern.permute.xlu0 %v177_v1  ;;  %vm52_vm8 = vcmask 7168  }
   0x2   :  { %v21_v2 = vld [vmem:[%s249_s1] sm:$0xff]  ;;  %v64_v3 = vmul.f32 %v63_v0, %v63_v0  ;;  %v225_v25 = vand.u32 127, %v23_v20  ;;  %v232_v43 = vshrl.u32 %v23_v20, 7 }
   0x3   :  { %41 = vperm.xlu1 %161, %v21_v2   ;;  %v20_v4 = vld [vmem:[%s248_s0] sm:$0xff] }
   0x4   :  { %v66_v5 = vsel %vm65_vm0, %v64_v3, 0.0  ;;  %v29_v6 = vsel %vm28_vm1, %v20_v4, -inf  ;;  %v98_v11 = vld [vmem:[%s250_s4] sm:$0xff]  ;;  %vm27_vm7 = vcmp.lt.s32.totalorder %v232_v43, 4  ;;  %vm140_vm11 = vcmp.eq.s32.totalorder %v232_v43, 0 }
   0x5   :  { %67 = vadd.xlane.f32.xlu0 %v66_v5  ;;  %v72_v12 = vld [vmem:[%s251_s3] sm:$0xff]  ;;  %v99_v14 = vmul.f32 1e+12, %v98_v11  ;;  %vm143_vm12 = vcmp.eq.s32.totalorder %v225_v25, 1  ;;  %vm141_vm13 = vcmp.eq.s32.totalorder %v225_v25, 0 }
   0x6   :  { %v73_v15 = vmul.f32 1e+12, %v72_v12  ;;  %vm144_vm14 = vmand %vm140_vm11, %vm143_vm12 }
   0x7   :  { %v155_v16 = vclamps-f32 %v99_v14, 1.0  ;;  %vm142_vm15 = vmand %vm140_vm11, %vm141_vm13 }
   0x8   :  { %v154_v17 = vclamps-f32 %v73_v15, 1.0 }
   0x9   :  { %30 = vmax.xlane.f32.xlu0 %v29_v6 }
  0x82   :  { %v42_v26 = vpop.permute.xlu1 %41 }
  0x83   :  { %vm43_vm2 = vcmp.eq.s32.totalorder %v225_v25, %v42_v26 }
  0x92   :  { %v68_v7 = vpop.xlane.xlu0 %67 }
  0x93   :  { %v69_v8 = vmax.f32 %v68_v7, 1e-24 }
  0x95   :  { %163 = vrsqrt.f32 %v69_v8 }
  0x96   :  { %v31_v9 = vpop.xlane.xlu0 %30 }
  0x97   :  { %v32_v10 = vsub.f32 %v20_v4, %v31_v9 }
  0x99   :  { %v33_v13 = vmul.f32 1.442695, %v32_v10  ;;  %v44_v33 = vsel %vm43_vm2, %v32_v10, 0.0 }
  0x9a   :  { %v45_v34 = vsel %vm28_vm1, %v44_v33, 0.0 }
  0x9b   :  { %165 = vpow2.f32 %v33_v13 }
  0x9f   :  { %v164_v18 = vpop.eup %163 }
  0xa0   :  { %v71_v19 = vmul.f32 %v164_v18, %v63_v0 }
  0xa2   :  { %v102_v21 = vsub.f32 %v71_v19, %v155_v16  ;;  %v76_v22 = vsub.f32 %v71_v19, %v154_v17 }
  0xa4   :  { %v103_v23 = vadd.f32 1e-06, %v102_v21  ;;  %v77_v24 = vadd.f32 1e-06, %v76_v22 }
  0xa5   :  { %v166_v29 = vpop.eup %165 }
  0xa6   :  { %v104_v27 = vmul.f32 %v103_v23, %v103_v23  ;;  %v78_v28 = vmul.f32 %v77_v24, %v77_v24  ;;  %v35_v32 = vsel %vm28_vm1, %v166_v29, 0.0 }
  0xa8   :  { %v105_v30 = vsel %vm65_vm0, %v104_v27, 0.0  ;;  %v79_v31 = vsel %vm65_vm0, %v78_v28, 0.0 }
  0xa9   :  { %106 = vadd.xlane.f32.xlu1 %v105_v30  ;;  %80 = vadd.xlane.f32.xlu0 %v79_v31 }
  0xad   :  { %36 = vadd.xlane.f32.xlu0 %v35_v32 }
  0xb1   :  { %46 = vadd.xlane.f32.xlu0 %v45_v34 }
 0x136   :  { %v107_v35 = vpop.xlane.xlu1 %106  ;;  %v81_v36 = vpop.xlane.xlu0 %80 }
 0x137   :  { %167 = vrsqrt.f32 %v107_v35  ;;  %vm110_vm3 = vcmp.eq.f32.partialorder %v107_v35, inf  ;;  %v113_v41 = vand.u32 2147483648, %v107_v35  ;;  %vm112_vm4 = vcmp.eq.f32.partialorder %v107_v35, 0.0 }
 0x138   :  { %169 = vrsqrt.f32 %v81_v36  ;;  %vm84_vm5 = vcmp.eq.f32.partialorder %v81_v36, inf  ;;  %v87_v45 = vand.u32 2147483648, %v81_v36  ;;  %vm86_vm6 = vcmp.eq.f32.partialorder %v81_v36, 0.0 }
 0x13a   :  { %v37_v37 = vpop.xlane.xlu0 %36 }
 0x13b   :  { %171 = vlog2.f32 %v37_v37 }
 0x13e   :  { %v47_v52 = vpop.xlane.xlu0 %46 }
 0x141   :  { %v168_v38 = vpop.eup %167 }
 0x142   :  { %v170_v39 = vpop.eup %169  ;;  %v109_v40 = vmul.f32 %v168_v38, %v107_v35 }
 0x143   :  { %v83_v42 = vmul.f32 %v170_v39, %v81_v36 }
 0x144   :  { %v111_v44 = vsel %vm110_vm3, %v107_v35, %v109_v40 }
 0x145   :  { %v172_v46 = vpop.eup %171  ;;  %v114_v47 = vsel %vm112_vm4, %v113_v41, %v111_v44  ;;  %v85_v48 = vsel %vm84_vm5, %v81_v36, %v83_v42 }
 0x146   :  { %v49_v49 = vmul.f32 0.6931472, %v172_v46  ;;  %v88_v50 = vsel %vm86_vm6, %v87_v45, %v85_v48  ;;  %v115_v51 = vadd.f32 1.0, %v114_v47  ;;  %v118_v57 = vmul.f32 -0.5, %v114_v47 }
 0x147   :  { %v89_v53 = vadd.f32 1.0, %v88_v50  ;;  %v92_v58 = vmul.f32 -0.5, %v88_v50  ;;  %v121_v60 = vand.u32 2147483647, %v114_v47  ;;  %v95_v63 = vand.u32 2147483647, %v88_v50 }
 0x148   :  { %v50_v54 = vsub.f32 %v49_v49, %v47_v52  ;;  %173 = vlog2.f32 %v115_v51  ;;  %v119_v59 = vadd.f32 1.0, %v118_v57 }
 0x149   :  { %175 = vlog2.f32 %v89_v53  ;;  %v93_v61 = vadd.f32 1.0, %v92_v58  ;;  %vm122_vm9 = vcmp.lt.f32.partialorder %v121_v60, 0.0004427343  ;;  %vm96_vm10 = vcmp.lt.f32.partialorder %v95_v63, 0.0004427343 }
 0x14a   :  { %v51_v55 = vsel %vm27_vm7, %v50_v54, 0.0  ;;  %v120_v2 = vmul.f32 %v119_v59, %v114_v47 }
 0x14b   :  { %v53_v56 = vsel %vm52_vm8, %v51_v55, 0.0  ;;  %v94_v4 = vmul.f32 %v93_v61, %v88_v50 }
 0x14c   :  { %54 = vadd.xlane.f32.xlu0 %v53_v56 }
 0x152   :  { %v174_v62 = vpop.eup %173 }
 0x153   :  { %v176_v0 = vpop.eup %175  ;;  %v117_v1 = vmul.f32 0.6931472, %v174_v62 }
 0x154   :  { %v91_v3 = vmul.f32 0.6931472, %v176_v0 }
 0x155   :  { %v123_v5 = vsel %vm122_vm9, %v120_v2, %v117_v1 }
 0x156   :  { %v124_v6 = vsub.f32 4.0, %v123_v5  ;;  %v97_v7 = vsel %vm96_vm10, %v94_v4, %v91_v3 }
 0x157   :  { %v126_v9 = vmul.f32 %v97_v7, %v97_v7 }
 0x158   :  { %v125_v8 = vmax.f32 %v124_v6, 0.0 }
 0x15a   :  { %v127_v10 = vmul.f32 %v125_v8, %v125_v8 }
 0x15c   :  { %v128_v11 = vadd.f32 %v127_v10, %v126_v9 }
 0x15e   :  { %v129_v12 = vsel %vm27_vm7, %v128_v11, 0.0 }
 0x15f   :  { %v130_v13 = vsel %vm52_vm8, %v129_v12, 0.0 }
 0x160   :  { %131 = vadd.xlane.f32.xlu0 %v130_v13 }
 0x1d9   :  { %v55_v14 = vpop.xlane.xlu0 %54 }
 0x1da   :  { %v56_v15 = vrot.slane %v55_v14, 4 }
 0x1dc   :  { %v57_v16 = vadd.f32 %v56_v15, %v55_v14 }
 0x1de   :  { %v58_v17 = vrot.slane %v57_v16, 2 }
 0x1e0   :  { %v59_v18 = vadd.f32 %v58_v17, %v57_v16 }
 0x1e2   :  { %v60_v19 = vrot.slane %v59_v18, 1 }
 0x1e4   :  { %v61_v20 = vadd.f32 %v60_v19, %v59_v18 }
 0x1e6   :  { %156 = vpush %v61_v20 }
 0x1ed   :  { %v132_v21 = vpop.xlane.xlu0 %131 }
 0x1ee   :  { %v133_v22 = vrot.slane %v132_v21, 4 }
 0x1f0   :  { %v134_v23 = vadd.f32 %v133_v22, %v132_v21 }
 0x1f2   :  { %v135_v24 = vrot.slane %v134_v23, 2 }
 0x1f4   :  { %v136_v26 = vadd.f32 %v135_v24, %v134_v23 }
 0x1f6   :  { %v137_v27 = vrot.slane %v136_v26, 1 }
 0x1f8   :  { %v138_v28 = vadd.f32 %v137_v27, %v136_v26 }
 0x1fa   :  { %158 = vpush %v138_v28 }
 0x217   :  { %s157_s0 = spop %156 }
 0x218   :  { %v147_v30 = vstv %s157_s0 }
 0x22b   :  { %s159_s3 = spop %158 }
 0x22c   :  { %v145_v29 = vstv %s159_s3 }
 0x22d   :  { %v146_v31 = vsel %vm144_vm14, %v145_v29, 0.0 }
 0x22e   :  { %v148_v32 = vsel %vm142_vm15, %v147_v30, %v146_v31 }
 0x22f   :  { %149 = vst [vmem:[%s252_s5] sm:$0xff] %v148_v32 }

</bundles_post_ra>
